<compile_context>
chip_gen: v7x
topology: tpu7x:2x2x1
jax: 0.10.0
libtpu: 0.0.40
codegen_flags: <defaults>
</compile_context>

<pallas_src>
import functools

import jax
import jax.numpy as jnp
from jax import lax
from jax.experimental import pallas as pl
from jax.experimental.pallas import tpu as pltpu


def _choose_tile(seq_len):
    """Largest row/query tile <= 256 that exactly divides S (un-padded blocks).

    256 fills the MXU M dimension on v6e/v7x, stays in the 128-256 range
    recommended for v5e, and keeps the per-step VMEM footprint inside v7x's
    64 MiB physical VMEM.
    """
    if seq_len <= 256:
        return seq_len
    for t in (256, 128):
        if seq_len % t == 0:
            return t
    return seq_len


# --------------------------------------------------------------------------- #
# Kernel 1: fused QKV projection (softmax scale pre-folded into Q columns).
# --------------------------------------------------------------------------- #
def qkv_kernel(x_ref, wqkv_ref, bqkv_ref, qkv_ref):
    cdt = wqkv_ref.dtype                                   # bf16 (or f32) operands
    x = x_ref[...].astype(cdt)                             # (TR, D)
    acc = (jnp.dot(x, wqkv_ref[...], preferred_element_type=jnp.float32)
           + bqkv_ref[...])                                # (TR, 3D) f32
    qkv_ref[...] = acc.astype(qkv_ref.dtype)               # store in compute dtype


# --------------------------------------------------------------------------- #
# Kernel 2: per-head attention + output projection for one query tile.
# --------------------------------------------------------------------------- #
def attn_kernel(q_ref, k_ref, v_ref, wo_ref, bo_ref, o_ref, ctx_scratch,
                *, num_heads):
    TQ, D = q_ref.shape
    hd = D // num_heads
    cdt = q_ref.dtype                                      # matmul operand dtype

    for h in range(num_heads):
        lo = h * hd
        q_h = q_ref[:, lo:lo + hd]                         # (TQ, hd), already scaled
        k_h = k_ref[:, lo:lo + hd]                         # (S,  hd)
        v_h = v_ref[:, lo:lo + hd]                         # (S,  hd)

        # q @ k^T as an NT matmul on the MXU (no explicit transpose op).
        scores = lax.dot_general(
            q_h, k_h, (((1,), (1,)), ((), ())),
            preferred_element_type=jnp.float32)            # (TQ, S) f32

        m = jnp.max(scores, axis=-1, keepdims=True)
        p = jnp.exp(scores - m)                            # unnormalized probs
        denom = jnp.sum(p, axis=-1, keepdims=True)

        # PV first, then normalize the small (TQ, hd) result (deferred softmax
        # normalization; reciprocal goes to the EUP slot).
        pv = jnp.dot(p.astype(cdt), v_h,
                     preferred_element_type=jnp.float32)   # (TQ, hd) f32
        ctx_scratch[:, lo:lo + hd] = (
            pv * pl.reciprocal(denom, approx=True)).astype(cdt)

    # ---- output projection ----------------------------------------------- #
    out = (jnp.dot(ctx_scratch[...], wo_ref[...],
                   preferred_element_type=jnp.float32)
           + bo_ref[...])                                  # (TQ, D) f32
    o_ref[...] = out.astype(o_ref.dtype)


def attention_forward(x, in_proj_w, in_proj_b, out_proj_w, out_proj_b,
                      num_heads, compute_dtype=jnp.bfloat16):
    """Equivalent of Attention.forward(x) (weight=False path, eval mode)."""
    B, S, D = x.shape
    if D % num_heads != 0:
        raise ValueError("d_model must be divisible by num_heads")
    hd = D // num_heads
    scale = 1.0 / (hd ** 0.5)

    # Fused, pre-transposed QKV weight (D, 3D); fold the softmax scale into the
    # Q columns (weight and bias).  Biases stay f32 (added to f32 accumulator).
    col_scale = jnp.concatenate(
        [jnp.full((D,), scale, jnp.float32), jnp.ones((2 * D,), jnp.float32)])
    wqkv_t = (in_proj_w.T.astype(jnp.float32) * col_scale[None, :]).astype(compute_dtype)
    bqkv = (in_proj_b.astype(jnp.float32) * col_scale).reshape(1, 3 * D)
    wo_t = out_proj_w.T.astype(compute_dtype)
    bo = out_proj_b.astype(jnp.float32).reshape(1, D)

    q_tile = _choose_tile(S)
    nq = S // q_tile

    # ---- explicit VMEM budget (headroom below v7x's 64 MiB physical) ------ #
    cbytes = jnp.dtype(compute_dtype).itemsize
    obytes = jnp.dtype(x.dtype).itemsize
    bytes_qkv = (2 * cbytes * (q_tile * D + 3 * D * D + 3 * D)   # double-buffered ins
                 + 2 * cbytes * q_tile * 3 * D                   # output double buffer
                 + 4 * q_tile * 3 * D)                           # f32 accumulator
    bytes_attn = (2 * cbytes * (q_tile * D + 2 * S * D + D * D + D)
                  + 2 * obytes * q_tile * D
                  + cbytes * q_tile * D                          # ctx scratch
                  + 8 * q_tile * S + 4 * q_tile * D)             # f32 scores + exp + pv
    vmem_qkv = int(max(32 << 20, min(2 * bytes_qkv, 100 << 20)))
    vmem_attn = int(max(32 << 20, min(2 * bytes_attn, 100 << 20)))

    # ---- kernel 1: QKV projection (Q pre-scaled), bf16 intermediate ------- #
    qkv = pl.pallas_call(
        qkv_kernel,
        out_shape=jax.ShapeDtypeStruct((B, S, 3 * D), compute_dtype),
        grid=(B, nq),
        in_specs=[
            pl.BlockSpec((pl.Squeezed(), q_tile, D), lambda b, i: (b, i, 0)),   # x rows
            pl.BlockSpec((D, 3 * D), lambda b, i: (0, 0)),                      # Wqkv^T
            pl.BlockSpec((1, 3 * D), lambda b, i: (0, 0)),                      # b_qkv
        ],
        out_specs=pl.BlockSpec((pl.Squeezed(), q_tile, 3 * D),
                               lambda b, i: (b, i, 0)),
        compiler_params=pltpu.CompilerParams(
            dimension_semantics=("parallel", "parallel"),
            vmem_limit_bytes=vmem_qkv),
    )(x, wqkv_t, bqkv)

    # ---- kernel 2: attention + output projection -------------------------- #
    # The same qkv array is passed three times with different column-block
    # indices (0 -> Q, 1 -> K, 2 -> V); only the Q block varies with qi, so the
    # K/V windows are not re-fetched across query tiles.
    kernel = functools.partial(attn_kernel, num_heads=num_heads)
    out = pl.pallas_call(
        kernel,
        out_shape=jax.ShapeDtypeStruct((B, S, D), x.dtype),
        grid=(B, nq),
        in_specs=[
            pl.BlockSpec((pl.Squeezed(), q_tile, D), lambda b, qi: (b, qi, 0)),  # Q rows
            pl.BlockSpec((pl.Squeezed(), S, D), lambda b, qi: (b, 0, 1)),        # K (all rows)
            pl.BlockSpec((pl.Squeezed(), S, D), lambda b, qi: (b, 0, 2)),        # V (all rows)
            pl.BlockSpec((D, D), lambda b, qi: (0, 0)),                          # Wo^T
            pl.BlockSpec((1, D), lambda b, qi: (0, 0)),                          # bo
        ],
        out_specs=pl.BlockSpec((pl.Squeezed(), q_tile, D),
                               lambda b, qi: (b, qi, 0)),
        scratch_shapes=[pltpu.VMEM((q_tile, D), compute_dtype)],
        compiler_params=pltpu.CompilerParams(
            dimension_semantics=("parallel", "parallel"),
            vmem_limit_bytes=vmem_attn),
    )(qkv, qkv, qkv, wo_t, bo)
    return out


def attention_reference(x, in_proj_w, in_proj_b, out_proj_w, out_proj_b, num_heads):
    """Plain-JAX reference matching torch.nn.MultiheadAttention (eval mode)."""
    B, S, D = x.shape
    hd = D // num_heads
    qkv = x @ in_proj_w.T + in_proj_b
    q, k, v = jnp.split(qkv, 3, axis=-1)
    q = q.reshape(B, S, num_heads, hd).transpose(0, 2, 1, 3)
    k = k.reshape(B, S, num_heads, hd).transpose(0, 2, 1, 3)
    v = v.reshape(B, S, num_heads, hd).transpose(0, 2, 1, 3)
    scores = jnp.einsum('bhqd,bhkd->bhqk', q, k) / (hd ** 0.5)
    p = jax.nn.softmax(scores, axis=-1)
    ctx = jnp.einsum('bhqk,bhkd->bhqd', p, v)
    ctx = ctx.transpose(0, 2, 1, 3).reshape(B, S, D)
    return ctx @ out_proj_w.T + out_proj_b


if __name__ == "__main__":
    # Small shapes consistent with the module: batch=2, seq=8, d_model=32, heads=4
    B, S, D, H = 2, 8, 32, 4
    key = jax.random.PRNGKey(0)
    kx, kw, kb, kow, kob = jax.random.split(key, 5)

    x = jax.random.normal(kx, (B, S, D), dtype=jnp.float32)

    # Deterministic parameter init (shapes as in nn.MultiheadAttention.__init__)
    in_proj_weight = jax.random.normal(kw, (3 * D, D), dtype=jnp.float32) * (1.0 / D ** 0.5)
    in_proj_bias = jax.random.normal(kb, (3 * D,), dtype=jnp.float32) * 0.02
    out_proj_weight = jax.random.normal(kow, (D, D), dtype=jnp.float32) * (1.0 / D ** 0.5)
    out_proj_bias = jax.random.normal(kob, (D,), dtype=jnp.float32) * 0.02

    ref = attention_reference(x, in_proj_weight, in_proj_bias,
                              out_proj_weight, out_proj_bias, H)

    # Default path: bf16 MXU operands, f32 accumulation / softmax.
    out = attention_forward(x, in_proj_weight, in_proj_bias,
                            out_proj_weight, out_proj_bias, H)
    # Full-f32 path (tighter structural check of the kernel itself).
    out_f32 = attention_forward(x, in_proj_weight, in_proj_bias,
                                out_proj_weight, out_proj_bias, H,
                                compute_dtype=jnp.float32)
    out, out_f32 = jax.block_until_ready((out, out_f32))

    assert out.shape == (B, S, D)
    assert jnp.allclose(out_f32, ref, rtol=1e-2, atol=1e-2)
    rel_err = jnp.max(jnp.abs(out - ref)) / jnp.max(jnp.abs(ref))
    assert rel_err < 5e-2

    print("KERNEL_OK")
</pallas_src>

<mosaic_0001>
module attributes {stable_mosaic.version = 11 : i64} {
  func.func @qkv_kernel(%arg0: i32, %arg1: i32, %arg2: memref<1x8x32xf32, #tpu.memory_space<vmem>>, %arg3: memref<32x96xbf16, #tpu.memory_space<vmem>>, %arg4: memref<1x96xf32, #tpu.memory_space<vmem>>, %arg5: memref<1x8x96xbf16, #tpu.memory_space<vmem>>) attributes {dimension_semantics = [#tpu.dimension_semantics<parallel>, #tpu.dimension_semantics<parallel>], iteration_bounds = array<i64: 2, 1>, scalar_prefetch = 0 : i64, scratch_operands = 0 : i64, tpu.core_type = #tpu.core_type<tc>, window_params = [{transform_indices = @transform_0, window_bounds = array<i64: 1, 8, 32>}, {pipeline_mode = #tpu.pipeline_mode<synchronous>, transform_indices = @transform_1, window_bounds = array<i64: 32, 96>}, {pipeline_mode = #tpu.pipeline_mode<synchronous>, transform_indices = @transform_2, window_bounds = array<i64: 1, 96>}, {transform_indices = @transform_3, window_bounds = array<i64: 1, 8, 96>}]} {
    %c0 = arith.constant 0 : index
    %c0_0 = arith.constant 0 : index
    %c0_1 = arith.constant 0 : index
    %0 = vector.load %arg2[%c0, %c0_0, %c0_1] : memref<1x8x32xf32, #tpu.memory_space<vmem>>, vector<1x8x32xf32>
    %1 = vector.shape_cast %0 : vector<1x8x32xf32> to vector<8x32xf32>
    %2 = arith.truncf %1 : vector<8x32xf32> to vector<8x32xbf16>
    %c0_2 = arith.constant 0 : index
    %c0_3 = arith.constant 0 : index
    %3 = vector.load %arg3[%c0_2, %c0_3] : memref<32x96xbf16, #tpu.memory_space<vmem>>, vector<32x96xbf16>
    %cst = arith.constant dense<0.000000e+00> : vector<8x96xf32>
    %4 = tpu.matmul %2, %3, %cst {dimension_numbers = #tpu.dot_dimension_numbers<[1], [0], [0], [1], [0, 0, 1, 1], [], []>} : vector<8x32xbf16>, vector<32x96xbf16>, vector<8x96xf32> -> vector<8x96xf32>
    %c0_4 = arith.constant 0 : index
    %c0_5 = arith.constant 0 : index
    %5 = vector.load %arg4[%c0_4, %c0_5] : memref<1x96xf32, #tpu.memory_space<vmem>>, vector<1x96xf32>
    %6 = vector.broadcast %5 : vector<1x96xf32> to vector<8x96xf32>
    %7 = arith.addf %4, %6 : vector<8x96xf32>
    %8 = arith.truncf %7 : vector<8x96xf32> to vector<8x96xbf16>
    %c0_6 = arith.constant 0 : index
    %c0_7 = arith.constant 0 : index
    %c0_8 = arith.constant 0 : index
    %9 = vector.load %arg5[%c0_6, %c0_7, %c0_8] : memref<1x8x96xbf16, #tpu.memory_space<vmem>>, vector<1x8x96xbf16>
    %10 = vector.shape_cast %9 : vector<1x8x96xbf16> to vector<8x96xbf16>
    %11 = vector.shape_cast %8 : vector<8x96xbf16> to vector<1x8x96xbf16>
    tpu.vector_store %arg5[%c0_6, %c0_7, %c0_8], %11 {strides = array<i32>} : memref<1x8x96xbf16, #tpu.memory_space<vmem>>, vector<1x8x96xbf16>,
    return
  }
  func.func @transform_0(%arg0: i32, %arg1: i32) -> (i32, i32, i32) {
    %c0_i32 = arith.constant 0 : i32
    %c0_i32_0 = arith.constant 0 : i32
    return %arg0, %arg1, %c0_i32 : i32, i32, i32
  }
  func.func @transform_1(%arg0: i32, %arg1: i32) -> (i32, i32) {
    %c0_i32 = arith.constant 0 : i32
    %c0_i32_0 = arith.constant 0 : i32
    %c0_i32_1 = arith.constant 0 : i32
    return %c0_i32, %c0_i32_0 : i32, i32
  }
  func.func @transform_2(%arg0: i32, %arg1: i32) -> (i32, i32) {
    %c0_i32 = arith.constant 0 : i32
    %c0_i32_0 = arith.constant 0 : i32
    %c0_i32_1 = arith.constant 0 : i32
    return %c0_i32, %c0_i32_0 : i32, i32
  }
  func.func @transform_3(%arg0: i32, %arg1: i32) -> (i32, i32, i32) {
    %c0_i32 = arith.constant 0 : i32
    %c0_i32_0 = arith.constant 0 : i32
    return %arg0, %arg1, %c0_i32 : i32, i32, i32
  }
}

</mosaic_0001>

<bundles_post_ra>
// kernel: tpu_custom_call.1
= control target key start
LH: loop header
LB: loop body
LE: loop exit
PB: predicated region body
PF: predicated region fallthrough
CT: control target
= control target key end

     0   :  { %8 = vsyncpa [#allocation3], 0  ;;  %s896_s0 = inlined_call_operand.hbm [shape: f32[2,8,32], index: 0, kind: input, shape index: {}]   ;;  %s897_s1 = inlined_call_operand.hbm [shape: bf16[32,96], index: 1, kind: input, shape index: {}]   ;;  %s898_s2 = inlined_call_operand.vmem [shape: f32[1,96], index: 2, kind: input, shape index: {}]   ;;  %s899_s3 = inlined_call_operand.hbm [shape: bf16[2,8,96], index: 3, kind: output, shape index: {}]  }
   0x1   :  { %10 = vsyncpa [#allocation3 + $0x1], 0 }
   0x2   :  { %11 = vsyncpa [#allocation6], 0 }
   0x3   :  { %12 = vsyncpa [#allocation4], 0 }
   0x4   :  { %14 = vsyncpa [#allocation4 + $0x1], 0  ;;  %s678_s12 = smov 0   ;;  %s680_s13 = smov 0  }
   0x5   :  { %s682_s14 = smov 0   ;;  %s684_s15 = smov 0  }
   0x6   :  { %s686_s16 = smov 0   ;;  %s688_s17 = smov 0  }
   0x7 LB: > { %s396_s18 = sadd.s32 4294967295, %s649_s17   ;;  %s397_s19 = sadd.s32 4294967294, %s649_s17   ;;  %s649_s17 = sphi %s688_s17, %s20_s17   ;;  %s645_s16 = sphi %s686_s16, %s923_s16   ;;  %s641_s15 = sphi %s684_s15, %s922_s15   ;;  %s637_s14 = sphi %s682_s14, %s921_s14   ;;  %s633_s13 = sphi %s680_s13, %s920_s13   ;;  %s629_s12 = sphi %s678_s12, %s919_s12  }
   0x8   : > { %p54_p0 = scmp.ne.s32.totalorder %s633_s13, %s629_s12  ;;  %p712_p1 = scmp.eq.s32.totalorder %s396_s18, 0 }
   0x9   : > { %p716_p2 = scmp.eq.s32.totalorder %s396_s18, 1  ;;  %p128_p3 = scmp.eq.s32.totalorder %s397_s19, 1 }
   0xa   : > { %s904_s20 = scalar_select %p712_p1, 1, 0 }
   0xb   : > { %s905_s21 = scalar_select %p716_p2, 1, 0 }
   0xc   : > { %p722_p4 = por %p712_p1, %p54_p0  ;;  %p398_p5 = scmp.ge.s32.totalorder %s649_s17, 1 }
   0xd   : > { %p727_p6 = por %p128_p3, %p54_p0  ;;  %p135_p7 = scmp.lt.s32.totalorder %s649_s17, 3 }
   0xe   : > { %s906_s22 = scalar_select %p722_p4, 1, 0 }
   0xf   : > { %s907_s23 = scalar_select %p727_p6, 1, 0 }
  0x10   : > { %p732_p8 = pnand %p398_p5, %p135_p7  ;;  %s651_s25 = smov [#allocation5]  }
  0x11   : > { %s147_s26 = sshll.u32 %s651_s25, 4  ;;  %s32_s28 = sadd.s32 1, %s645_s16  ;;  %s148_s26 = int_to_ptr.vmem [resolvable:$true] %s147_s26 }
  0x12   : > { %s908_s24 = scalar_select %p732_p8, 1, 0 }
  0x13   : > { %p434_p9 = pneg %p732_p8  ;;  %s505_s4 = scalar_lea.hbm %s897_s1, 256 }
  0x14   : > { %p506_p12 = scmp.ne.s32.totalorder %s897_s1, %s505_s4  ;;  %p512_p5 = scmp.lt.u32.totalorder %s505_s4, %s897_s1 }
  0x15   : > { %p741_p11 = pnand %p434_p9, %p712_p1 }
  0x17   : > { %p507_p13 = pneg %p741_p11 }
  0x19   : > { %p508_p0 = pnand %p507_p13, %p506_p12 }
  0x1b   : > { %p509_p3 = pneg %p508_p0 }
  0x1d   : > { %p514_p7 = pnand %p512_p5, %p509_p3 }
  0x1f   : > { %517 = shalt.err (!%p514_p7)
}
  0x20   : > { %s518_s9 = scalar_lea.vmem %s148_s26, 256  ;;  %p526_p1 = scmp.lt.s32.totalorder %s148_s26, %s148_s26 }
  0x21   : > { %p519_p9 = scmp.ne.s32.totalorder %s148_s26, %s518_s9  ;;  %p527_p4 = scmp.lt.s32.totalorder %s518_s9, %s518_s9 }
  0x23   : > { %p521_p10 = pnand %p519_p9, %p507_p13  ;;  %p528_p8 = por %p527_p4, %p526_p1 }
  0x25   : > { %p522_p6 = pneg %p521_p10 }
  0x27   : > { %p529_p2 = pnand %p528_p8, %p522_p6 }
  0x29   : > { %532 = shalt.err (!%p529_p2)
}
  0x2a   : > { %s652_s10 = smov 64   ;;  %s653_s11 = smov 4  }
  0x2b   : > { %437 = dma.hbm_to_vmem [thread:$0]  (!%p741_p11), %s897_s1, 256, %s148_s26, [#allocation6], %s652_s10, %s652_s10, %s653_s11  }
  0x2c   : > { %p34_p1 = scmp.ge.s32.totalorder %s32_s28, 2  ;;  %s41_s25 = sadd.s32 1, %s637_s14 }
  0x2d   : > { %p48_p2 = scmp.ne.s32.totalorder %s637_s14, %s633_s13  ;;  %p49_p4 = scmp.eq.s32.totalorder %s649_s17, 0 }
  0x2e   : > { %s925_s28 = smov (%p34_p1, %s32_s28), 0  ;;  %p911_p8 = scmp.ne.s32.totalorder %s905_s21, 0 }
  0x2f   : > { %p768_p6 = por %p49_p4, %p48_p2  ;;  %s36_s27 = ssub.s32 %s645_s16, %s925_s28 }
  0x30   : > { %p774_p10 = por %p911_p8, %p48_p2  ;;  %p447_p12 = scmp.lt.s32.totalorder %s649_s17, 2 }
  0x31   : > { %p39_p11 = scmp.eq.s32.totalorder %s36_s27, 0  ;;  %s164_s26 = sand.u32 1, %s637_s14  }
  0x32   : > { %s401_s4 = sshll.u32 %s164_s26, 3  ;;  %s402_s6 = sshll.u32 %s645_s16, 7 }
  0x33   : > { %s783_s5 = scalar_select %p39_p11, %s637_s14, %s41_s25  }
  0x34   : > { %s789_s9 = scalar_lea.hbm %s896_s0, %s402_s6  ;;  %s168_s21 = scalar_lea.vmem [#allocation2], %s401_s4 }
  0x35   : > { %s176_s10 = sshll.u32 %s168_s21, 4  ;;  %p795_p13 = pnand %p447_p12, %p768_p6  ;;  %s791_s10 = int_to_ptr.vmem [resolvable:$true] %s176_s10 }
  0x36   : > { %s165_s18 = scalar_lea.sflag [#allocation3], %s164_s26  ;;  %s533_s19 = scalar_lea.hbm %s789_s9, 128 }
  0x37   : > { %p534_p0 = scmp.ne.s32.totalorder %s789_s9, %s533_s19  ;;  %p535_p3 = pneg %p795_p13 }
  0x38   : > { %s538_s4 = scalar_lea.hbm %s896_s0, 256  ;;  %p539_p9 = scmp.lt.u32.totalorder %s789_s9, %s896_s0 }
  0x39   : > { %p536_p5 = pnand %p535_p3, %p534_p0  ;;  %p540_p1 = scmp.lt.u32.totalorder %s538_s4, %s533_s19 }
  0x3a   : > { %p542_p4 = scmp.lt.u32.totalorder %s533_s19, %s789_s9 }
  0x3b   : > { %p537_p7 = pneg %p536_p5  ;;  %p541_p2 = por %p540_p1, %p539_p9 }
  0x3d   : > { %p543_p6 = por %p542_p4, %p541_p2 }
  0x3f   : > { %p544_p8 = pnand %p543_p6, %p537_p7 }
  0x41   : > { %547 = shalt.err (!%p544_p8)
}
  0x42   : > { %s548_s26 = scalar_lea.vmem %s791_s10, 128  ;;  %s654_s7 = smov [#allocation2]  }
  0x43   : > { %p549_p12 = scmp.ne.s32.totalorder %s791_s10, %s548_s26  ;;  %s553_s8 = sshll.u32 %s654_s7, 4  ;;  %s554_s8 = int_to_ptr.vmem [resolvable:$false] %s553_s8 }
  0x44   : > { %s555_s21 = scalar_lea.vmem %s554_s8, 256  ;;  %p556_p5 = scmp.lt.s32.totalorder %s791_s10, %s554_s8 }
  0x45   : > { %p551_p11 = pnand %p549_p12, %p535_p3  ;;  %p557_p9 = scmp.lt.s32.totalorder %s555_s21, %s548_s26 }
  0x47   : > { %p552_p0 = pneg %p551_p11  ;;  %p558_p1 = por %p557_p9, %p556_p5 }
  0x49   : > { %p559_p2 = pnand %p558_p1, %p552_p0 }
  0x4b   : > { %562 = shalt.err (!%p559_p2)
}
  0x4c   : > { %441 = dma.hbm_to_vmem [thread:$0]  (!%p795_p13), %s789_s9, 128, %s791_s10, %s165_s18  }
  0x4d   : > { %p914_p7 = scmp.ne.s32.totalorder %s908_s24, 0 }
  0x4e   : > { %s827_s19 = sand.u32 (!%p914_p7), 1, %s633_s13   ;;  %p915_p3 = scmp.ne.s32.totalorder (!%p914_p7), %s906_s22, 0 }
  0x4f   : > { %185 = sbr.rel (%p914_p7) target bundleno = 329 (0x149), region = 32  ;;  %s404_s25 = sshll.u32 (!%p914_p7), %s827_s19, 3 }
  0x50   : > { %s188_s27 = scalar_lea.sflag (!%p914_p7), [#allocation3], %s827_s19  ;;  %s191_s4 = scalar_lea.vmem (!%p914_p7), [#allocation2], %s404_s25 }
  0x56   : > { %616 = dma.done.wait (%p915_p3), %s188_s27, 128  }
  0x57   : > { %618 = vsyncadd (%p915_p3), %s188_s27, 4294967168  ;;  %p916_p4 = scmp.ne.s32.totalorder %s904_s20, 0 }
  0x59   : > { %620 = dma.done.wait (%p916_p4), [#allocation6], 256  }
  0x5a   : > { %622 = vsyncadd (%p916_p4), [#allocation6], 4294967040  ;;  %v655_v0 = vmov 0.0   ;;  %vm656_vm0 = vmmov 0   ;;  %v503_v1 = vld [vmem:[#allocation5] sm:$0xff]   ;;  %v504_v2 = vld [vmem:[#allocation5 + $0x8] sm:$0xff]  }
  0x5b   : > { %418 = vmatprep.subr.bf16.mxu0 %v655_v0  ;;  %422 = vmatprep.mubr.msk.bf16.mxu0 %vm656_vm0, %v655_v0  ;;  %v219_v3 = vld [vmem:[%s191_s4] sm:$0xff]  ;;  %vm244_vm1 = vcmask 261120   ;;  %s406_s22 = sshll.u32 %s827_s19, 2  ;;  %s412_s9 = sshll.u32 %s641_s15, 6  ;;  %vm289_vm2 = vcmask 781312  }
  0x5c   : > { %419 = vmatpush3.bf16.msra.mxu0 %v503_v1  ;;  %v220_v4 = vpack.c.bf16 %v219_v3, %v219_v3  ;;  %v407_v5 = vld [vmem:[%s898_s2] ss:$0 sm:$0xff]  ;;  %s217_s10 = scalar_lea.vmem [#allocation7], %s406_s22  ;;  %s847_s6 = scalar_lea.hbm %s899_s3, %s412_s9 }
  0x5d   : > { %420 = vmatprep.subr.bf16.mxu0 %v655_v0  ;;  %s306_s11 = sshll.u32 %s217_s10, 4  ;;  %s292_s15 = scalar_lea.sflag [#allocation4], %s827_s19  ;;  %s849_s11 = int_to_ptr.vmem [resolvable:$true] %s306_s11 }
  0x5e   : > { %s563_s26 = scalar_lea.vmem %s849_s11, 64  ;;  %s657_s7 = smov [#allocation7]  }
  0x5f   : > { %p564_p13 = scmp.ne.s32.totalorder %s849_s11, %s563_s26  ;;  %s567_s8 = sshll.u32 %s657_s7, 4  ;;  %s568_s8 = int_to_ptr.vmem [resolvable:$false] %s567_s8 }
  0x60   : > { %421 = vmatpush3.bf16.msra.mxu0 %v504_v2  ;;  %s569_s21 = scalar_lea.vmem %s568_s8, 128  ;;  %p570_p12 = scmp.lt.s32.totalorder %s849_s11, %s568_s8 }
  0x61   : > { %p565_p6 = pnand %p564_p13, %p774_p10  ;;  %p571_p11 = scmp.lt.s32.totalorder %s569_s21, %s563_s26 }
  0x63   : > { %423 = vmatmul.mubr.msk.bf16.vlgmr.msra.gmra.mrb[0].mxu0 %vm244_vm1, %v220_v4  ;;  %p566_p8 = pneg %p565_p6  ;;  %p572_p0 = por %p571_p11, %p570_p12 }
  0x65   : > { %p573_p5 = pnand %p572_p0, %p566_p8 }
 0x136   : > { %v282_v6 = vpop.f32.mrb[0].mxu0 }
 0x137   : > { %v283_v7 = vadd.f32 %v407_v5, %v282_v6  ;;  %v424_v8 = vpop.f32.mrb[1].mxu0 }
 0x138   : > { %v285_v9 = vpop.f32.mrb[2].mxu0 }
 0x139   : > { %v288_v10 = vpack.c.bf16 %v283_v7, %v283_v7  ;;  %v425_v11 = vpop.f32.mrb[3].mxu0 }
 0x13b   : > { %290 = vst.msk [vmem:[%s217_s10] sm:$0xf] %vm289_vm2, %v288_v10 }
 0x13c   : > { %576 = shalt.err (!%p573_p5)
}
 0x13d   : > { %s577_s19 = scalar_lea.hbm %s847_s6, 64  ;;  %s581_s4 = scalar_lea.hbm %s899_s3, 128 }
 0x13e   : > { %p578_p9 = scmp.ne.s32.totalorder %s847_s6, %s577_s19  ;;  %p582_p7 = scmp.lt.u32.totalorder %s847_s6, %s899_s3 }
 0x13f   : > { %p583_p3 = scmp.lt.u32.totalorder %s581_s4, %s577_s19  ;;  %p585_p13 = scmp.lt.u32.totalorder %s577_s19, %s847_s6 }
 0x140   : > { %p579_p1 = pnand %p578_p9, %p774_p10 }
 0x141   : > { %p584_p4 = por %p583_p3, %p582_p7 }
 0x142   : > { %p580_p2 = pneg %p579_p1 }
 0x143   : > { %p586_p6 = por %p585_p13, %p584_p4 }
 0x145   : > { %p587_p8 = pnand %p586_p6, %p580_p2 }
 0x147   : > { %590 = shalt.err (!%p587_p8)
}
 0x148   : > { %432 = dma.vmem_to_hbm [thread:$0]  (%p774_p10), %s849_s11, 64, %s847_s6, %s292_s15  }
 0x149 PF: > { %s318_s20 = sand.u32 1, %s629_s12   ;;  %p917_p12 = scmp.ne.s32.totalorder %s907_s23, 0 }
 0x14a   : > { %p918_p11 = scmp.ge.s32.totalorder %s649_s17, 2  ;;  %s319_s9 = scalar_lea.sflag [#allocation4], %s318_s20 }
 0x14c   : > { %p443_p0 = pnand %p918_p11, %p917_p12 }
 0x14e   : > { %624 = dma.done.wait (!%p443_p0), %s319_s9, 64  }
 0x14f   : > { %626 = vsyncadd (!%p443_p0), %s319_s9, 4294967232  ;;  %s20_s17 = sadd.s32 1, %s649_s17   ;;  %s919_s12 = smov %s633_s13 }
 0x150   : > { %p17_p5 = scmp.ge.s32.totalorder %s20_s17, 4   ;;  %s920_s13 = smov %s637_s14 }
 0x151   : > { %s921_s14 = smov %s783_s5  ;;  %s922_s15 = smov %s645_s16 }
 0x152   : > { %s923_s16 = smov %s925_s28  ;;  %19 = sbr.rel (!%p17_p5) target bundleno = 7 (0x7), region = 81 }
 0x159   :  { %324 = vsyncpa [#allocation3], 1 }
 0x15a   :  { %326 = vsyncpa [#allocation3 + $0x1], 1 }
 0x15b   :  { %327 = vsyncpa [#allocation6], 1 }
 0x15c   :  { %328 = vsyncpa [#allocation4], 1 }
 0x15d   :  { %330 = vsyncpa [#allocation4 + $0x1], 1 }

</bundles_post_ra>
